<compile_context>
chip_gen: v7x
topology: tpu7x:2x2x1
jax: 0.10.0
libtpu: 0.0.40
codegen_flags: <defaults>
</compile_context>

<pallas_src>
import functools

import jax
import jax.numpy as jnp
from jax.experimental import pallas as pl
from jax.experimental.pallas import tpu as pltpu


def _round_up(x, m):
    return ((x + m - 1) // m) * m


def _pick_tile(dim, pref, align):
    # Smallest legal tile covering `dim` when it is small, else the preferred
    # large tile.
    return _round_up(dim, align) if dim <= pref else pref


# ----------------------------------------------------------------------------
# Pallas kernel: tiled GEMM with fused bias (+ ReLU) epilogue
# ----------------------------------------------------------------------------
def _linear_kernel(x_ref, w_ref, b_ref, o_ref, acc_ref, *, relu):
    a = x_ref[...]
    if a.dtype != jnp.bfloat16:           # cast inside the kernel (no extra HBM pass)
        a = a.astype(jnp.bfloat16)
    prod = jnp.dot(a, w_ref[...], preferred_element_type=jnp.float32)

    k = pl.program_id(2)

    @pl.when(k == 0)                       # init accumulator from first matmul
    def _():
        acc_ref[...] = prod

    @pl.when(k != 0)
    def _():
        acc_ref[...] += prod

    @pl.when(k == pl.num_programs(2) - 1)  # fused bias + ReLU epilogue
    def _():
        y = acc_ref[...] + b_ref[...]      # (tm,tn) + (1,tn) broadcast
        if relu:
            y = jnp.maximum(y, 0.0)
        o_ref[...] = y.astype(o_ref.dtype)


# ----------------------------------------------------------------------------
# One-time parameter preparation (hoisted out of the forward pass)
# ----------------------------------------------------------------------------
def prepare_linear_params(w, b, *, tn=512, tk=512):
    """w: PyTorch nn.Linear layout (n_out, n_in); b: (n_out,).

    Pre-transposes to (n_in, n_out), pads K/N to tile multiples and casts to
    bf16 ONCE, so no padding / casting / transposing happens per forward call.
    Returns (w_padded, b_padded, static_meta) where static_meta holds Python
    ints (bind them with functools.partial, do NOT pass them through jit).
    """
    n_out, n_in = w.shape
    tn = _pick_tile(n_out, tn, 128)
    tk = _pick_tile(n_in, tk, 128)
    # v7x dual-TensorCore coverage: make sure the N grid axis has >= 2 blocks
    # for mid/large n_out so both cores get work even when M is small.
    if n_out >= 256:
        tn = min(tn, _round_up(-(-n_out // 2), 128))
    Kp, Np = _round_up(n_in, tk), _round_up(n_out, tn)

    # TODO(synk): optional fp8 (e4m3) weight path for v7x (bf16 x fp8 MXU) —
    # halves the dominant weight stream for small-M inference; not a drop-in
    # on v5e/v6e so it is left out here.
    w_t = jnp.transpose(w, (1, 0)).astype(jnp.bfloat16)          # (n_in, n_out)
    w_p = jnp.pad(w_t, ((0, Kp - n_in), (0, Np - n_out)))        # zero K/N pad
    b_p = jnp.pad(b.astype(jnp.float32), (0, Np - n_out)).reshape(1, Np)
    meta = {"n_in": int(n_in), "n_out": int(n_out), "tn": int(tn), "tk": int(tk)}
    return w_p, b_p, meta


# ----------------------------------------------------------------------------
# Forward: y = relu(x @ W^T + b)   (ReLU optional, like PzFullyConnected)
# ----------------------------------------------------------------------------
def pz_fully_connected(x, w_p, b_p, *, n_in, n_out, tn, tk,
                       withrelu=True, tm=512, out_dtype=None,
                       force_pallas=False):
    *lead, K = x.shape
    assert K == n_in, "input feature dim mismatch"
    M = 1
    for d in lead:
        M *= d
    x2 = x.reshape(M, K)
    out_dtype = x.dtype if out_dtype is None else out_dtype

    # Tiny-problem fallback: Pallas fixed costs dominate, plain XLA dot wins.
    if (not force_pallas) and (M * K * n_out < (1 << 19)):
        y = jnp.dot(x2, w_p[:n_in, :n_out].astype(jnp.float32)) + b_p[0, :n_out]
        if withrelu:
            y = jnp.maximum(y, 0.0)
        return y.astype(out_dtype).reshape(*lead, n_out)

    Kp, Np = w_p.shape
    tm = _pick_tile(M, tm, 16)            # 16: bf16 packs two rows per sublane
    Mp = _round_up(M, tm)

    grid = (Mp // tm, Np // tn, Kp // tk)

    # If x is only streamed once (single N block) read it in its native dtype
    # and cast in-kernel; otherwise pre-cast to bf16 to halve the re-reads.
    x_op_dtype = jnp.bfloat16 if (grid[1] > 1 and x.dtype != jnp.bfloat16) else x.dtype
    if Mp == M and Kp == K and x_op_dtype == x.dtype:
        x_in = x2                          # no extra HBM pass at all
    else:
        # single fused cast+pad pass under jit (K zero-pad keeps the reduction exact)
        x_in = jnp.pad(x2.astype(x_op_dtype), ((0, Mp - M), (0, Kp - K)))

    x_bytes = jnp.dtype(x_op_dtype).itemsize
    o_bytes = jnp.dtype(out_dtype).itemsize

    # Tight VMEM budget: double-buffered inputs + double-buffered output + acc.
    need = (2 * (tm * tk * x_bytes + tk * tn * 2 + tn * 4)
            + 2 * tm * tn * o_bytes + tm * tn * 4)
    vmem_limit = int(min(112 * 2**20, max(2 * need + (4 << 20), 16 * 2**20)))

    out = pl.pallas_call(
        functools.partial(_linear_kernel, relu=withrelu),
        out_shape=jax.ShapeDtypeStruct((Mp, Np), out_dtype),
        grid=grid,
        in_specs=[pl.BlockSpec((tm, tk), lambda i, j, k: (i, k)),
                  # TODO(synk): sweep pipeline_mode=pl.Buffered(3) on the weight
                  # spec for the weight-BW-bound (single-i-block) regime.
                  pl.BlockSpec((tk, tn), lambda i, j, k: (k, j)),
                  pl.BlockSpec((1, tn), lambda i, j, k: (0, j))],
        out_specs=pl.BlockSpec((tm, tn), lambda i, j, k: (i, j)),
        scratch_shapes=[pltpu.VMEM((tm, tn), jnp.float32)],
        compiler_params=pltpu.CompilerParams(
            dimension_semantics=("parallel", "parallel", "arbitrary"),
            vmem_limit_bytes=vmem_limit),
        cost_estimate=pl.CostEstimate(
            flops=2 * Mp * Kp * Np,
            transcendentals=0,
            # count per-tile re-reads: x streamed grid_j times, w grid_i times
            bytes_accessed=(Mp * Kp * x_bytes * grid[1]
                            + Kp * Np * 2 * grid[0]
                            + Np * 4 * grid[0]
                            + Mp * Np * o_bytes)),
    )(x_in, w_p, b_p)
    return out[:M, :n_out].reshape(*lead, n_out)


# ----------------------------------------------------------------------------
# Deterministic init mirroring nn.Linear's default (uniform +/- 1/sqrt(fan_in))
# ----------------------------------------------------------------------------
def init_params(key, n_inputs, n_outputs):
    kw, kb = jax.random.split(key)
    bound = 1.0 / (n_inputs ** 0.5)
    w = jax.random.uniform(kw, (n_outputs, n_inputs), jnp.float32, -bound, bound)
    b = jax.random.uniform(kb, (n_outputs,), jnp.float32, -bound, bound)
    return w, b


if __name__ == "__main__":
    key = jax.random.PRNGKey(0)
    pkey, xkey = jax.random.split(key)

    batch, seq, hidden, n_outputs = 2, 8, 32, 16
    w, b = init_params(pkey, hidden, n_outputs)
    # LazyLinear infers in_features on first call; here it is fixed explicitly.
    w_p, b_p, meta = prepare_linear_params(w, b)

    x = jax.random.normal(xkey, (batch, seq, hidden), jnp.float32)

    # Static metadata is bound via partial (NOT traced through jit).
    fwd = jax.jit(functools.partial(pz_fully_connected, withrelu=True,
                                    force_pallas=True, **meta))
    out = fwd(x, w_p, b_p)
    jax.block_until_ready(out)

    # Reference check (f32 math; kernel uses bf16 operands -> loose tolerance).
    ref = jnp.maximum(jnp.einsum("bsh,oh->bso", x, w) + b, 0.0)
    assert out.shape == (batch, seq, n_outputs) and out.dtype == x.dtype
    assert jnp.allclose(out, ref, atol=3e-2, rtol=3e-2)
    print("KERNEL_OK")
</pallas_src>

<mosaic_0001>
module attributes {stable_mosaic.version = 11 : i64} {
  func.func @_linear_kernel(%arg0: i32, %arg1: i32, %arg2: i32, %arg3: memref<16x128xf32, #tpu.memory_space<vmem>>, %arg4: memref<128x128xbf16, #tpu.memory_space<vmem>>, %arg5: memref<1x128xf32, #tpu.memory_space<vmem>>, %arg6: memref<16x128xf32, #tpu.memory_space<vmem>>, %arg7: memref<16x128xf32, #tpu.memory_space<vmem>>) attributes {dimension_semantics = [#tpu.dimension_semantics<parallel>, #tpu.dimension_semantics<parallel>, #tpu.dimension_semantics<arbitrary>], iteration_bounds = array<i64: 1, 1, 1>, scalar_prefetch = 0 : i64, scratch_operands = 1 : i64, tpu.core_type = #tpu.core_type<tc>, window_params = [{transform_indices = @transform_0, window_bounds = array<i64: 16, 128>}, {transform_indices = @transform_1, window_bounds = array<i64: 128, 128>}, {transform_indices = @transform_2, window_bounds = array<i64: 1, 128>}, {transform_indices = @transform_3, window_bounds = array<i64: 16, 128>}]} {
    %c0 = arith.constant 0 : index
    %c0_0 = arith.constant 0 : index
    %0 = vector.load %arg3[%c0, %c0_0] : memref<16x128xf32, #tpu.memory_space<vmem>>, vector<16x128xf32>
    %1 = arith.truncf %0 : vector<16x128xf32> to vector<16x128xbf16>
    %c0_1 = arith.constant 0 : index
    %c0_2 = arith.constant 0 : index
    %2 = vector.load %arg4[%c0_1, %c0_2] : memref<128x128xbf16, #tpu.memory_space<vmem>>, vector<128x128xbf16>
    %cst = arith.constant dense<0.000000e+00> : vector<16x128xf32>
    %3 = tpu.matmul %1, %2, %cst {dimension_numbers = #tpu.dot_dimension_numbers<[1], [0], [0], [1], [0, 0, 1, 1], [], []>} : vector<16x128xbf16>, vector<128x128xbf16>, vector<16x128xf32> -> vector<16x128xf32>
    %c0_i32 = arith.constant 0 : i32
    %4 = arith.cmpi eq, %arg2, %c0_i32 : i32
    %5 = arith.extui %4 : i1 to i32
    %c0_i32_3 = arith.constant 0 : i32
    %6 = arith.cmpi ne, %5, %c0_i32_3 : i32
    scf.if %6 {
      %c0_8 = arith.constant 0 : index
      %c0_9 = arith.constant 0 : index
      %13 = vector.load %arg7[%c0_8, %c0_9] : memref<16x128xf32, #tpu.memory_space<vmem>>, vector<16x128xf32>
      tpu.vector_store %arg7[%c0_8, %c0_9], %3 {strides = array<i32>} : memref<16x128xf32, #tpu.memory_space<vmem>>, vector<16x128xf32>,
    } else {
    }
    %c0_i32_4 = arith.constant 0 : i32
    %7 = arith.cmpi ne, %arg2, %c0_i32_4 : i32
    %8 = arith.extui %7 : i1 to i32
    %c0_i32_5 = arith.constant 0 : i32
    %9 = arith.cmpi ne, %8, %c0_i32_5 : i32
    scf.if %9 {
      %c0_8 = arith.constant 0 : index
      %c0_9 = arith.constant 0 : index
      %13 = vector.load %arg7[%c0_8, %c0_9] : memref<16x128xf32, #tpu.memory_space<vmem>>, vector<16x128xf32>
      %14 = arith.addf %13, %3 : vector<16x128xf32>
      %c0_10 = arith.constant 0 : index
      %c0_11 = arith.constant 0 : index
      %15 = vector.load %arg7[%c0_10, %c0_11] : memref<16x128xf32, #tpu.memory_space<vmem>>, vector<16x128xf32>
      tpu.vector_store %arg7[%c0_10, %c0_11], %14 {strides = array<i32>} : memref<16x128xf32, #tpu.memory_space<vmem>>, vector<16x128xf32>,
    } else {
    }
    %c0_i32_6 = arith.constant 0 : i32
    %10 = arith.cmpi eq, %arg2, %c0_i32_6 : i32
    %11 = arith.extui %10 : i1 to i32
    %c0_i32_7 = arith.constant 0 : i32
    %12 = arith.cmpi ne, %11, %c0_i32_7 : i32
    scf.if %12 {
      %c0_8 = arith.constant 0 : index
      %c0_9 = arith.constant 0 : index
      %13 = vector.load %arg7[%c0_8, %c0_9] : memref<16x128xf32, #tpu.memory_space<vmem>>, vector<16x128xf32>
      %c0_10 = arith.constant 0 : index
      %c0_11 = arith.constant 0 : index
      %14 = vector.load %arg5[%c0_10, %c0_11] : memref<1x128xf32, #tpu.memory_space<vmem>>, vector<1x128xf32>
      %15 = vector.broadcast %14 : vector<1x128xf32> to vector<16x128xf32>
      %16 = arith.addf %13, %15 : vector<16x128xf32>
      %cst_12 = arith.constant 0.000000e+00 : f32
      %17 = vector.broadcast %cst_12 : f32 to vector<16x128xf32>
      %18 = arith.maximumf %16, %17 : vector<16x128xf32>
      %c0_13 = arith.constant 0 : index
      %c0_14 = arith.constant 0 : index
      %19 = vector.load %arg6[%c0_13, %c0_14] : memref<16x128xf32, #tpu.memory_space<vmem>>, vector<16x128xf32>
      tpu.vector_store %arg6[%c0_13, %c0_14], %18 {strides = array<i32>} : memref<16x128xf32, #tpu.memory_space<vmem>>, vector<16x128xf32>,
    } else {
    }
    return
  }
  func.func @transform_0(%arg0: i32, %arg1: i32, %arg2: i32) -> (i32, i32) {
    %c0_i32 = arith.constant 0 : i32
    return %arg0, %arg2 : i32, i32
  }
  func.func @transform_1(%arg0: i32, %arg1: i32, %arg2: i32) -> (i32, i32) {
    %c0_i32 = arith.constant 0 : i32
    return %arg2, %arg1 : i32, i32
  }
  func.func @transform_2(%arg0: i32, %arg1: i32, %arg2: i32) -> (i32, i32) {
    %c0_i32 = arith.constant 0 : i32
    %c0_i32_0 = arith.constant 0 : i32
    return %c0_i32, %arg1 : i32, i32
  }
  func.func @transform_3(%arg0: i32, %arg1: i32, %arg2: i32) -> (i32, i32) {
    %c0_i32 = arith.constant 0 : i32
    return %arg0, %arg1 : i32, i32
  }
}

</mosaic_0001>

<bundles_post_ra>
// kernel: pz_fully_connected.1
= control target key start
LH: loop header
LB: loop body
LE: loop exit
PB: predicated region body
PF: predicated region fallthrough
CT: control target
= control target key end

     0   :  { %8 = vsyncpa [#allocation4], 0  ;;  %s251_s12 = smov [#allocation3]   ;;  %s303_s0 = inlined_call_operand.vmem [shape: f32[16,128], index: 0, kind: input, shape index: {}]   ;;  %s304_s1 = inlined_call_operand.hbm [shape: bf16[128,128], index: 1, kind: input, shape index: {}]   ;;  %s305_s2 = inlined_call_operand.vmem [shape: f32[1,128], index: 2, kind: input, shape index: {}]   ;;  %s306_s3 = inlined_call_operand.vmem [shape: f32[16,128], index: 3, kind: output, shape index: {}]  }
   0x1   :  { %s16_s13 = sshll.u32 %s251_s12, 4  ;;  %s227_s16 = scalar_lea.hbm %s304_s1, 1024  ;;  %s17_s13 = int_to_ptr.vmem [resolvable:$true] %s16_s13 }
   0x2   :  { %p228_p0 = scmp.ne.s32.totalorder %s304_s1, %s227_s16  ;;  %p231_p1 = scmp.lt.u32.totalorder %s227_s16, %s304_s1 }
   0x4   :  { %p233_p2 = pnand %p231_p1, %p228_p0 }
   0x6   :  { %236 = shalt.err (!%p233_p2)
}
   0x7   :  { %s237_s21 = scalar_lea.vmem %s17_s13, 1024  ;;  %p242_p4 = scmp.lt.s32.totalorder %s17_s13, %s17_s13 }
   0x8   :  { %p238_p3 = scmp.ne.s32.totalorder %s17_s13, %s237_s21  ;;  %p243_p5 = scmp.lt.s32.totalorder %s237_s21, %s237_s21 }
   0xa   :  { %p244_p6 = por %p243_p5, %p242_p4 }
   0xc   :  { %p245_p7 = pnand %p244_p6, %p238_p3 }
   0xe   :  { %248 = shalt.err (!%p245_p7)
}
   0xf   :  { %s252_s22 = smov 64   ;;  %s253_s23 = smov 4  }
  0x10   :  { %22 = dma.hbm_to_vmem [thread:$0]  %s304_s1, 1024, %s17_s13, [#allocation4], %s252_s22, %s252_s22, %s253_s23  }
  0x11   :  { %249 = dma.done.wait [#allocation4], 1024  }
  0x12   :  { %250 = vsyncadd [#allocation4], 4294966272  ;;  %v254_v0 = vmov 0.0   ;;  %vm255_vm0 = vmmov 0   ;;  %v219_v1 = vld [vmem:[#allocation3] sm:$0xff]   ;;  %v220_v2 = vld [vmem:[#allocation3 + $0x8] sm:$0xff]  }
  0x13   :  { %194 = vmatprep.subr.bf16.mxu0 %v254_v0  ;;  %210 = vmatprep.mubr.msk.bf16.mxu0 %vm255_vm0, %v254_v0  ;;  %v221_v3 = vld [vmem:[#allocation3 + $0x10] sm:$0xff]   ;;  %v222_v4 = vld [vmem:[#allocation3 + $0x18] sm:$0xff]   ;;  %v223_v5 = vld [vmem:[#allocation3 + $0x20] sm:$0xff]  }
  0x14   :  { %195 = vmatpush3.bf16.msra.mxu0 %v219_v1  ;;  %v224_v6 = vld [vmem:[#allocation3 + $0x28] sm:$0xff]   ;;  %v225_v7 = vld [vmem:[#allocation3 + $0x30] sm:$0xff]   ;;  %v226_v8 = vld [vmem:[#allocation3 + $0x38] sm:$0xff]  }
  0x15   :  { %196 = vmatprep.subr.bf16.mxu0 %v254_v0  ;;  %v29_v9 = vld [vmem:[%s303_s0] sm:$0xff]  ;;  %v30_v10 = vld [vmem:[%s303_s0 + $0x8] sm:$0xff] }
  0x16   :  { %v31_v11 = vpack.c.bf16 %v30_v10, %v29_v9  ;;  %v184_v12 = vld [vmem:[%s305_s2] ss:$0 sm:$0xff] }
  0x18   :  { %197 = vmatpush3.bf16.msra.mxu0 %v220_v2 }
  0x19   :  { %198 = vmatprep.subr.bf16.mxu0 %v254_v0 }
  0x1c   :  { %199 = vmatpush3.bf16.msra.mxu0 %v221_v3 }
  0x1d   :  { %200 = vmatprep.subr.bf16.mxu0 %v254_v0 }
  0x20   :  { %201 = vmatpush3.bf16.msra.mxu0 %v222_v4 }
  0x21   :  { %202 = vmatprep.subr.bf16.mxu0 %v254_v0 }
  0x24   :  { %203 = vmatpush3.bf16.msra.mxu0 %v223_v5 }
  0x25   :  { %204 = vmatprep.subr.bf16.mxu0 %v254_v0 }
  0x28   :  { %205 = vmatpush3.bf16.msra.mxu0 %v224_v6 }
  0x29   :  { %206 = vmatprep.subr.bf16.mxu0 %v254_v0 }
  0x2c   :  { %207 = vmatpush3.bf16.msra.mxu0 %v225_v7 }
  0x2d   :  { %208 = vmatprep.subr.bf16.mxu0 %v254_v0 }
  0x30   :  { %209 = vmatpush3.bf16.msra.mxu0 %v226_v8 }
  0x33   :  { %211 = vmatmul.mubr.bf16.vlgmr.msra.gmra.mrb[0].mxu0 %v31_v11 }
 0x106   :  { %v130_v13 = vpop.f32.mrb[0].mxu0 }
 0x107   :  { %v165_v14 = vadd.f32 %v184_v12, %v130_v13  ;;  %v212_v15 = vpop.f32.mrb[1].mxu0 }
 0x108   :  { %v133_v16 = vpop.f32.mrb[2].mxu0 }
 0x109   :  { %v167_v17 = vmax.f32 %v165_v14, 0.0  ;;  %v166_v18 = vadd.f32 %v184_v12, %v133_v16  ;;  %v213_v19 = vpop.f32.mrb[3].mxu0 }
 0x10b   :  { %169 = vst [vmem:[%s306_s3] sm:$0xff] %v167_v17  ;;  %v168_v20 = vmax.f32 %v166_v18, 0.0 }
 0x10d   :  { %170 = vst [vmem:[%s306_s3 + $0x8] sm:$0xff] %v168_v20 }
 0x10e   :  { %175 = vsyncpa [#allocation4], 1 }

</bundles_post_ra>
